<compile_context>
chip_gen: v5e
topology: v5e:2x2
jax: 0.10.0
libtpu: 0.0.40
codegen_flags: <defaults>
</compile_context>

<pallas_src>
import functools

import jax
import jax.numpy as jnp
from jax.experimental import pallas as pl
from jax.experimental.pallas import tpu as pltpu


def _round_up(v, m):
    return (v + m - 1) // m * m


def _vmem_budget():
    """Generation-aware VMEM limit (~3/4 of physical per-core VMEM)."""
    try:
        cap = int(pltpu.get_tpu_info().vmem_capacity_bytes)
    except Exception:  # pragma: no cover - conservative fallback (valid on every gen)
        cap = 64 * 1024 * 1024
    return (cap * 3) // 4  # ~96 MiB on v5e/v6e, ~48 MiB on v7x


# ----------------------------------------------------------------------------
# Pallas kernels
# ----------------------------------------------------------------------------
def _pool_kernel(x_ref, o_ref):
    """0.5 * (MaxPool + AvgPool) over (ph, pw) patches, natural NCHW layout.

    x_ref: (TR, ph, TW)  rows = (n, c, ho), sublanes = in-patch row i, lanes = w
    o_ref: (TR, TW // pw) lane-dense pooled output
    """
    _, ph, tw = x_ref.shape
    two = o_ref.shape[-1]
    pw = tw // two

    # Height reduction: unrolled static reads over the ph sublane slabs (exact, VPU only).
    mx = x_ref[:, 0, :].astype(jnp.float32)
    sm = mx
    for i in range(1, ph):
        xi = x_ref[:, i, :].astype(jnp.float32)
        mx = jnp.maximum(mx, xi)
        sm = sm + xi

    # Width (pw-group) reduction + compaction to lane-dense output via 0/1 selection
    # matrices on the MXU (free while the path is DMA-bound).  Selection entries are
    # exact, so any error is bounded by the MXU's f32 matmul rounding.
    # TODO(synk): an XLU-only variant (pltpu.roll tree + strided lane compaction) would
    # avoid the MXU entirely once lane-strided slices are relied upon.
    w_i = jax.lax.broadcasted_iota(jnp.int32, (tw, two), 0)
    wo_i = jax.lax.broadcasted_iota(jnp.int32, (tw, two), 1)

    grp = ((w_i >= wo_i * pw) & (w_i < (wo_i + 1) * pw)).astype(jnp.float32)
    gsum = jnp.dot(sm, grp, preferred_element_type=jnp.float32)          # (TR, two)

    gmax = None
    for d in range(pw):
        sel = (w_i == wo_i * pw + d).astype(jnp.float32)
        v = jnp.dot(mx, sel, preferred_element_type=jnp.float32)
        gmax = v if gmax is None else jnp.maximum(gmax, v)

    o_ref[...] = (0.5 * gmax + (0.5 / (ph * pw)) * gsum).astype(o_ref.dtype)


def _conv_kernel(x_ref, w_ref, b_ref, o_ref):
    # x_ref: (TM, K), w_ref: (K, Ep), b_ref: (1, Ep), o_ref: (TM, Ep).  K un-padded.
    acc = jnp.dot(x_ref[...], w_ref[...], preferred_element_type=jnp.float32)
    o_ref[...] = (acc + b_ref[...].astype(jnp.float32)).astype(o_ref.dtype)


def _conv_kernel_ktiled(x_ref, w_ref, b_ref, o_ref, acc_ref):
    # Same matmul with a K grid axis and an f32 VMEM accumulator (large weights).
    k = pl.program_id(1)

    @pl.when(k == 0)
    def _():
        acc_ref[...] = jnp.zeros_like(acc_ref)

    acc_ref[...] += jnp.dot(x_ref[...], w_ref[...], preferred_element_type=jnp.float32)

    @pl.when(k == pl.num_programs(1) - 1)
    def _():
        o_ref[...] = (acc_ref[...] + b_ref[...].astype(jnp.float32)).astype(o_ref.dtype)


# ----------------------------------------------------------------------------
# Spec / tile helpers
# ----------------------------------------------------------------------------
def _const_block_spec(block_shape):
    """Whole-array block with a constant index map, single-buffered when supported."""
    index_map = lambda *_: (0,) * len(block_shape)
    try:
        return pl.BlockSpec(block_shape, index_map, pipeline_mode=pl.Buffered(1))
    except Exception:  # pipeline_mode/Buffered unavailable -> default double buffering
        return pl.BlockSpec(block_shape, index_map)


def _pool_row_tile(R3, ph, TW, TWo, isz, pw, budget):
    fixed = (pw + 3) * TW * TWo * 4                     # iota + selection matrices
    per_row = 2 * ph * TW * isz + 2 * TWo * isz + 3 * TW * 4 + 2 * TWo * 4
    avail = max(budget - fixed, 1 << 20)
    tr = avail // per_row
    if tr >= R3:
        return R3                                       # full extent always legal
    return max(8, (tr // 8) * 8)


def _conv_row_tile(M, k_blk, Ep, csize, osize, resident_bytes, budget, acc):
    avail = max(budget - resident_bytes, 2 << 20)
    per_row = 2 * k_blk * csize + 2 * Ep * osize + Ep * 4 + (Ep * 4 if acc else 0)
    tm = avail // per_row
    if tm >= M:
        return M
    return max(8, (tm // 8) * 8)


# ----------------------------------------------------------------------------
# Wrappers
# ----------------------------------------------------------------------------
def _pad_to_patch(x, ph, pw):
    # Matches the F.pad(0) calls in the PyTorch forward (padding is real zero input,
    # so it participates in both the max and the mean exactly as in the module).
    _, _, H, W = x.shape
    pad_h = (-H) % ph
    pad_w = (-W) % pw
    if pad_h or pad_w:
        x = jnp.pad(x, ((0, 0), (0, 0), (0, pad_h), (0, pad_w)))
    return x


def patch_embed_pool(x, patch_size=4):
    """proj_type='pool': 0.5 * (MaxPool2d + AvgPool2d), kernel=stride=patch_size."""
    ph = pw = patch_size
    x = _pad_to_patch(x, ph, pw)
    N, C, H, W = x.shape
    Ho, Wo = H // ph, W // pw
    R3 = N * C * Ho

    # Free reshape (pure dim split, no data movement): rows = (n, c, ho).
    x3 = x.reshape(R3, ph, W)

    # Lane tile: split W only when the tile and tile/pw are both multiples of 128
    # (lane-dense output stores); otherwise keep the full extent (always legal).
    TW = W
    for mult in (8, 4, 2, 1):
        cand = mult * 128 * pw
        if cand <= W and W % cand == 0:
            TW = cand
            break
    TWo = TW // pw

    isz = jnp.dtype(x.dtype).itemsize
    limit = _vmem_budget()
    TR = _pool_row_tile(R3, ph, TW, TWo, isz, pw, budget=limit // 2)

    out = pl.pallas_call(
        _pool_kernel,
        out_shape=jax.ShapeDtypeStruct((R3, Wo), x.dtype),
        grid=(pl.cdiv(R3, TR), W // TW),
        in_specs=[pl.BlockSpec((TR, ph, TW), lambda r, wc: (r, 0, wc))],
        out_specs=pl.BlockSpec((TR, TWo), lambda r, wc: (r, wc)),
        compiler_params=pltpu.CompilerParams(
            dimension_semantics=("parallel", "parallel"),
            vmem_limit_bytes=limit,
        ),
    )(x3)

    return out.reshape(N, C, Ho, Wo)


def patch_embed_conv(x, weight, bias, patch_size=4, compute_dtype=jnp.bfloat16,
                     channels_last=False, k_tile=None):
    """proj_type='conv': Conv2d(in_chans, embed_dim, kernel=stride=patch_size).

    weight: (embed_dim, in_chans, ph, pw)   bias: (embed_dim,)
    compute_dtype: matmul operand dtype (default bf16, f32 accumulation; pass None for
                   exact f32 operands).
    channels_last: return NHWC and skip the NCHW transpose (the mmseg consumer flattens
                   to (N, L, E) immediately, so this saves an output HBM round trip).
    k_tile: force the K-tiled accumulator path with this K tile (multiple of 128); by
            default it is selected automatically when the weight is too big to keep
            resident in VMEM.
    """
    ph = pw = patch_size
    x = _pad_to_patch(x, ph, pw)
    N, C, H, W = x.shape
    Ho, Wo = H // ph, W // pw
    E = weight.shape[0]
    K = C * ph * pw
    M = N * Ho * Wo

    cdt = x.dtype if compute_dtype is None else compute_dtype

    # Patch extraction (im2col).  Casting to the compute dtype *before* the transpose
    # halves the bytes moved by that HBM pass when cdt is bf16.
    # TODO(synk): this transpose is still one extra HBM round trip over the activations;
    # fusing the (c, i, j) gather into the kernel needs strided lane loads.
    xp = (
        x.astype(cdt)
        .reshape(N, C, Ho, ph, Wo, pw)
        .transpose(0, 2, 4, 1, 3, 5)
        .reshape(M, K)
    )
    w2d = weight.reshape(E, K).T.astype(cdt)        # (K, E), K ordered (c, i, j)
    b2d = bias.reshape(1, E).astype(jnp.float32)

    # Only the embedding dim is padded to 128 (lane-dense output stores); K stays as-is.
    Ep = _round_up(E, 128)
    if Ep != E:
        w2d = jnp.pad(w2d, ((0, 0), (0, Ep - E)))
        b2d = jnp.pad(b2d, ((0, 0), (0, Ep - E)))

    csize = jnp.dtype(cdt).itemsize
    osize = jnp.dtype(x.dtype).itemsize
    limit = _vmem_budget()
    budget = limit // 2

    weight_bytes = K * Ep * csize
    use_ktile = (k_tile is not None) or (weight_bytes > budget // 2)

    if not use_ktile:
        resident = (K * Ep + Ep) * csize            # single-buffered weight + bias
        TM = _conv_row_tile(M, K, Ep, csize, osize, resident, budget, acc=False)
        out = pl.pallas_call(
            _conv_kernel,
            out_shape=jax.ShapeDtypeStruct((M, Ep), x.dtype),
            grid=(pl.cdiv(M, TM),),
            in_specs=[
                pl.BlockSpec((TM, K), lambda i: (i, 0)),
                _const_block_spec((K, Ep)),
                _const_block_spec((1, Ep)),
            ],
            out_specs=pl.BlockSpec((TM, Ep), lambda i: (i, 0)),
            compiler_params=pltpu.CompilerParams(
                dimension_semantics=("parallel",),
                vmem_limit_bytes=limit,
            ),
        )(xp, w2d, b2d)
    else:
        TK = int(k_tile) if k_tile is not None else 512
        TK = max(128, (TK // 128) * 128)
        TK = min(TK, _round_up(K, 128))
        Kp = _round_up(K, TK)
        if Kp != K:                                 # zero-padding K is numerics-exact
            xp = jnp.pad(xp, ((0, 0), (0, Kp - K)))
            w2d = jnp.pad(w2d, ((0, Kp - K), (0, 0)))
        resident = 2 * TK * Ep * csize + Ep * csize  # streamed (double-buffered) w tile
        TM = _conv_row_tile(M, TK, Ep, csize, osize, resident, budget, acc=True)
        out = pl.pallas_call(
            _conv_kernel_ktiled,
            out_shape=jax.ShapeDtypeStruct((M, Ep), x.dtype),
            grid=(pl.cdiv(M, TM), Kp // TK),
            in_specs=[
                pl.BlockSpec((TM, TK), lambda i, k: (i, k)),
                pl.BlockSpec((TK, Ep), lambda i, k: (k, 0)),
                _const_block_spec((1, Ep)),
            ],
            out_specs=pl.BlockSpec((TM, Ep), lambda i, k: (i, 0)),
            scratch_shapes=[pltpu.VMEM((TM, Ep), jnp.float32)],
            compiler_params=pltpu.CompilerParams(
                dimension_semantics=("parallel", "arbitrary"),
                vmem_limit_bytes=limit,
            ),
        )(xp, w2d, b2d)

    out = out[:, :E].reshape(N, Ho, Wo, E)          # NHWC / (N, L, E)-friendly layout
    if channels_last:
        return out
    # NCHW to match the PyTorch Conv2d output layout (one extra output transpose;
    # consumers that immediately flatten should pass channels_last=True).
    return out.transpose(0, 3, 1, 2)


# TODO(synk): norm_layer is None by default in the module; the LayerNorm branch is not
# implemented here.


# ----------------------------------------------------------------------------
# Demo / self-check
# ----------------------------------------------------------------------------
if __name__ == "__main__":
    key = jax.random.PRNGKey(0)
    k_x, k_w, k_b, k_x2, k_w2, k_b2 = jax.random.split(key, 6)

    patch_size = 4
    in_chans = 4
    embed_dim = 32

    # x: NCHW, batch=2, channels=4, spatial=16
    x = jax.random.normal(k_x, (2, in_chans, 16, 16), dtype=jnp.float32)
    N, C, H, W = x.shape
    Ho, Wo = H // patch_size, W // patch_size

    # ------- default path: proj_type='pool' -------
    y_pool = patch_embed_pool(x, patch_size=patch_size)
    jax.block_until_ready(y_pool)

    xr = x.reshape(N, C, Ho, patch_size, Wo, patch_size)
    ref_pool = 0.5 * (xr.max(axis=(3, 5)) + xr.mean(axis=(3, 5)))
    assert y_pool.shape == (N, C, Ho, Wo)
    # Loose-ish tolerance: the lane-group compaction uses 0/1 selection matmuls whose
    # accuracy depends on the backend's default f32 matmul precision (<=~1e-2 abs worst
    # case, exact with full f32 matmuls).
    assert jnp.allclose(y_pool, ref_pool, atol=2e-2, rtol=1e-2)

    # ------- proj_type='conv', default bf16 compute -------
    weight = jax.random.normal(
        k_w, (embed_dim, in_chans, patch_size, patch_size), dtype=jnp.float32) * 0.02
    bias = jax.random.normal(k_b, (embed_dim,), dtype=jnp.float32) * 0.02

    y_conv = patch_embed_conv(x, weight, bias, patch_size=patch_size)
    jax.block_until_ready(y_conv)

    ref_conv = jax.lax.conv_general_dilated(
        x.astype(jnp.bfloat16), weight.astype(jnp.bfloat16),
        window_strides=(patch_size, patch_size), padding="VALID",
        dimension_numbers=("NCHW", "OIHW", "NCHW"),
        preferred_element_type=jnp.float32,
    ) + bias.reshape(1, embed_dim, 1, 1)
    assert y_conv.shape == (N, embed_dim, Ho, Wo)
    assert jnp.allclose(y_conv, ref_conv, atol=2e-3, rtol=2e-2)

    # ------- proj_type='conv', f32 operands + forced K-tiled accumulator path -------
    in_chans2 = 32
    x2 = jax.random.normal(k_x2, (2, in_chans2, 16, 16), dtype=jnp.float32)
    weight2 = jax.random.normal(
        k_w2, (embed_dim, in_chans2, patch_size, patch_size), dtype=jnp.float32) * 0.02
    bias2 = jax.random.normal(k_b2, (embed_dim,), dtype=jnp.float32) * 0.02

    y_conv2 = patch_embed_conv(x2, weight2, bias2, patch_size=patch_size,
                               compute_dtype=None, k_tile=128)
    jax.block_until_ready(y_conv2)

    ref_conv2 = jax.lax.conv_general_dilated(
        x2, weight2,
        window_strides=(patch_size, patch_size), padding="VALID",
        dimension_numbers=("NCHW", "OIHW", "NCHW"),
    ) + bias2.reshape(1, embed_dim, 1, 1)
    assert y_conv2.shape == (2, embed_dim, Ho, Wo)
    assert jnp.allclose(y_conv2, ref_conv2, atol=1e-2, rtol=1e-2)

    print("KERNEL_OK")
</pallas_src>

<mosaic_0001>
module attributes {stable_mosaic.version = 11 : i64} {
  func.func @_pool_kernel(%arg0: i32, %arg1: i32, %arg2: memref<32x4x16xf32, #tpu.memory_space<vmem>>, %arg3: memref<32x4xf32, #tpu.memory_space<vmem>>) attributes {dimension_semantics = [#tpu.dimension_semantics<parallel>, #tpu.dimension_semantics<parallel>], iteration_bounds = array<i64: 1, 1>, scalar_prefetch = 0 : i64, scratch_operands = 0 : i64, tpu.core_type = #tpu.core_type<tc>, window_params = [{transform_indices = @transform_0, window_bounds = array<i64: 32, 4, 16>}, {transform_indices = @transform_1, window_bounds = array<i64: 32, 4>}]} {
    %c0 = arith.constant 0 : index
    %c0_0 = arith.constant 0 : index
    %c0_1 = arith.constant 0 : index
    %0 = vector.load %arg2[%c0, %c0_0, %c0_1] : memref<32x4x16xf32, #tpu.memory_space<vmem>>, vector<32x1x16xf32>
    %1 = vector.shape_cast %0 : vector<32x1x16xf32> to vector<32x16xf32>
    %c0_2 = arith.constant 0 : index
    %c1 = arith.constant 1 : index
    %c0_3 = arith.constant 0 : index
    %2 = vector.load %arg2[%c0_2, %c1, %c0_3] : memref<32x4x16xf32, #tpu.memory_space<vmem>>, vector<32x1x16xf32>
    %3 = vector.shape_cast %2 : vector<32x1x16xf32> to vector<32x16xf32>
    %4 = arith.maximumf %1, %3 : vector<32x16xf32>
    %5 = arith.addf %1, %3 : vector<32x16xf32>
    %c0_4 = arith.constant 0 : index
    %c2 = arith.constant 2 : index
    %c0_5 = arith.constant 0 : index
    %6 = vector.load %arg2[%c0_4, %c2, %c0_5] : memref<32x4x16xf32, #tpu.memory_space<vmem>>, vector<32x1x16xf32>
    %7 = vector.shape_cast %6 : vector<32x1x16xf32> to vector<32x16xf32>
    %8 = arith.maximumf %4, %7 : vector<32x16xf32>
    %9 = arith.addf %5, %7 : vector<32x16xf32>
    %c0_6 = arith.constant 0 : index
    %c3 = arith.constant 3 : index
    %c0_7 = arith.constant 0 : index
    %10 = vector.load %arg2[%c0_6, %c3, %c0_7] : memref<32x4x16xf32, #tpu.memory_space<vmem>>, vector<32x1x16xf32>
    %11 = vector.shape_cast %10 : vector<32x1x16xf32> to vector<32x16xf32>
    %12 = arith.maximumf %8, %11 : vector<32x16xf32>
    %13 = arith.addf %9, %11 : vector<32x16xf32>
    %14 = tpu.iota {dimensions = array<i32: 0>} : vector<16x4xi32>
    %15 = tpu.iota {dimensions = array<i32: 1>} : vector<16x4xi32>
    %c4_i32 = arith.constant 4 : i32
    %16 = vector.broadcast %c4_i32 : i32 to vector<16x4xi32>
    %17 = arith.muli %15, %16 : vector<16x4xi32>
    %18 = arith.cmpi sge, %14, %17 : vector<16x4xi32>
    %c1_i32 = arith.constant 1 : i32
    %19 = vector.broadcast %c1_i32 : i32 to vector<16x4xi32>
    %20 = arith.addi %15, %19 : vector<16x4xi32>
    %c4_i32_8 = arith.constant 4 : i32
    %21 = vector.broadcast %c4_i32_8 : i32 to vector<16x4xi32>
    %22 = arith.muli %20, %21 : vector<16x4xi32>
    %23 = arith.cmpi slt, %14, %22 : vector<16x4xi32>
    %24 = arith.andi %18, %23 : vector<16x4xi1>
    %25 = arith.extui %24 : vector<16x4xi1> to vector<16x4xi32>
    %26 = arith.sitofp %25 : vector<16x4xi32> to vector<16x4xf32>
    %cst = arith.constant dense<0.000000e+00> : vector<32x4xf32>
    %27 = tpu.matmul %13, %26, %cst {dimension_numbers = #tpu.dot_dimension_numbers<[1], [0], [0], [1], [0, 0, 1, 1], [], []>} : vector<32x16xf32>, vector<16x4xf32>, vector<32x4xf32> -> vector<32x4xf32>
    %c4_i32_9 = arith.constant 4 : i32
    %28 = vector.broadcast %c4_i32_9 : i32 to vector<16x4xi32>
    %29 = arith.muli %15, %28 : vector<16x4xi32>
    %c0_i32 = arith.constant 0 : i32
    %30 = vector.broadcast %c0_i32 : i32 to vector<16x4xi32>
    %31 = arith.addi %29, %30 : vector<16x4xi32>
    %32 = arith.cmpi eq, %14, %31 : vector<16x4xi32>
    %33 = arith.extui %32 : vector<16x4xi1> to vector<16x4xi32>
    %34 = arith.sitofp %33 : vector<16x4xi32> to vector<16x4xf32>
    %cst_10 = arith.constant dense<0.000000e+00> : vector<32x4xf32>
    %35 = tpu.matmul %12, %34, %cst_10 {dimension_numbers = #tpu.dot_dimension_numbers<[1], [0], [0], [1], [0, 0, 1, 1], [], []>} : vector<32x16xf32>, vector<16x4xf32>, vector<32x4xf32> -> vector<32x4xf32>
    %c4_i32_11 = arith.constant 4 : i32
    %36 = vector.broadcast %c4_i32_11 : i32 to vector<16x4xi32>
    %37 = arith.muli %15, %36 : vector<16x4xi32>
    %c1_i32_12 = arith.constant 1 : i32
    %38 = vector.broadcast %c1_i32_12 : i32 to vector<16x4xi32>
    %39 = arith.addi %37, %38 : vector<16x4xi32>
    %40 = arith.cmpi eq, %14, %39 : vector<16x4xi32>
    %41 = arith.extui %40 : vector<16x4xi1> to vector<16x4xi32>
    %42 = arith.sitofp %41 : vector<16x4xi32> to vector<16x4xf32>
    %cst_13 = arith.constant dense<0.000000e+00> : vector<32x4xf32>
    %43 = tpu.matmul %12, %42, %cst_13 {dimension_numbers = #tpu.dot_dimension_numbers<[1], [0], [0], [1], [0, 0, 1, 1], [], []>} : vector<32x16xf32>, vector<16x4xf32>, vector<32x4xf32> -> vector<32x4xf32>
    %44 = arith.maximumf %35, %43 : vector<32x4xf32>
    %c4_i32_14 = arith.constant 4 : i32
    %45 = vector.broadcast %c4_i32_14 : i32 to vector<16x4xi32>
    %46 = arith.muli %15, %45 : vector<16x4xi32>
    %c2_i32 = arith.constant 2 : i32
    %47 = vector.broadcast %c2_i32 : i32 to vector<16x4xi32>
    %48 = arith.addi %46, %47 : vector<16x4xi32>
    %49 = arith.cmpi eq, %14, %48 : vector<16x4xi32>
    %50 = arith.extui %49 : vector<16x4xi1> to vector<16x4xi32>
    %51 = arith.sitofp %50 : vector<16x4xi32> to vector<16x4xf32>
    %cst_15 = arith.constant dense<0.000000e+00> : vector<32x4xf32>
    %52 = tpu.matmul %12, %51, %cst_15 {dimension_numbers = #tpu.dot_dimension_numbers<[1], [0], [0], [1], [0, 0, 1, 1], [], []>} : vector<32x16xf32>, vector<16x4xf32>, vector<32x4xf32> -> vector<32x4xf32>
    %53 = arith.maximumf %44, %52 : vector<32x4xf32>
    %c4_i32_16 = arith.constant 4 : i32
    %54 = vector.broadcast %c4_i32_16 : i32 to vector<16x4xi32>
    %55 = arith.muli %15, %54 : vector<16x4xi32>
    %c3_i32 = arith.constant 3 : i32
    %56 = vector.broadcast %c3_i32 : i32 to vector<16x4xi32>
    %57 = arith.addi %55, %56 : vector<16x4xi32>
    %58 = arith.cmpi eq, %14, %57 : vector<16x4xi32>
    %59 = arith.extui %58 : vector<16x4xi1> to vector<16x4xi32>
    %60 = arith.sitofp %59 : vector<16x4xi32> to vector<16x4xf32>
    %cst_17 = arith.constant dense<0.000000e+00> : vector<32x4xf32>
    %61 = tpu.matmul %12, %60, %cst_17 {dimension_numbers = #tpu.dot_dimension_numbers<[1], [0], [0], [1], [0, 0, 1, 1], [], []>} : vector<32x16xf32>, vector<16x4xf32>, vector<32x4xf32> -> vector<32x4xf32>
    %62 = arith.maximumf %53, %61 : vector<32x4xf32>
    %cst_18 = arith.constant 5.000000e-01 : f32
    %63 = vector.broadcast %cst_18 : f32 to vector<32x4xf32>
    %64 = arith.mulf %63, %62 : vector<32x4xf32>
    %cst_19 = arith.constant 3.125000e-02 : f32
    %65 = vector.broadcast %cst_19 : f32 to vector<32x4xf32>
    %66 = arith.mulf %65, %27 : vector<32x4xf32>
    %67 = arith.addf %64, %66 : vector<32x4xf32>
    %c0_20 = arith.constant 0 : index
    %c0_21 = arith.constant 0 : index
    %68 = vector.load %arg3[%c0_20, %c0_21] : memref<32x4xf32, #tpu.memory_space<vmem>>, vector<32x4xf32>
    tpu.vector_store %arg3[%c0_20, %c0_21], %67 {strides = array<i32>} : memref<32x4xf32, #tpu.memory_space<vmem>>, vector<32x4xf32>,
    return
  }
  func.func @transform_0(%arg0: i32, %arg1: i32) -> (i32, i32, i32) {
    %c0_i32 = arith.constant 0 : i32
    %c0_i32_0 = arith.constant 0 : i32
    return %arg0, %c0_i32, %arg1 : i32, i32, i32
  }
  func.func @transform_1(%arg0: i32, %arg1: i32) -> (i32, i32) {
    %c0_i32 = arith.constant 0 : i32
    return %arg0, %arg1 : i32, i32
  }
}

</mosaic_0001>

<bundles_post_ra>
// kernel: tpu_custom_call.1
= control target key start
LH: loop header
LB: loop body
LE: loop exit
PB: predicated region body
PF: predicated region fallthrough
CT: control target
= control target key end

     0   :  { %v328_v0 = vlaneseq  ;;  %vm379_vm0 = vcmask 1041409   ;;  %vm382_vm3 = vcmask 1042434   ;;  %vm385_vm4 = vcmask 1043459   ;;  %s1806_s0 = inlined_call_operand.vmem [shape: f32[32,4,16], index: 0, kind: input, shape index: {}]   ;;  %s1807_s1 = inlined_call_operand.vmem [shape: f32[32,4], index: 1, kind: output, shape index: {}]  }
   0x1   :  { %v812_v1 = vld [vmem:[%s1806_s0 + $0x40] sm:$0x1]  ;;  %v817_v2 = vld [vmem:[%s1806_s0 + $0x44] sm:$0x1]  ;;  %v824_v5 = vld [vmem:[%s1806_s0 + $0x48] sm:$0x1] }
   0x2   :  { %1895 = vst [vmem:[#allocation2_spill] sm:$0xff] %v812_v1  ;;  %v819_v3 = vshrl.u32 %v328_v0, 7  ;;  %v332_v4 = vand.u32 127, %v328_v0  ;;  %v829_v6 = vld [vmem:[%s1806_s0 + $0x4c] sm:$0x1]  ;;  %v1808_v43 = vmov 1.0  }
   0x3   :  { %1896 = vst [vmem:[#allocation3_spill] sm:$0xff] %v817_v2  ;;  %v834_v7 = vld [vmem:[%s1806_s0 + $0x50] sm:$0x1]  ;;  %v839_v8 = vld [vmem:[%s1806_s0 + $0x54] sm:$0x1]  ;;  %vm388_vm9 = vcmask 1044484  }
   0x4   :  { %1897 = vst [vmem:[#allocation4_spill] sm:$0xff] %v824_v5  ;;  %v844_v9 = vld [vmem:[%s1806_s0 + $0x58] sm:$0x1]  ;;  %v849_v10 = vld [vmem:[%s1806_s0 + $0x5c] sm:$0x1]  ;;  %v852_v11 = vadd.s32 8, %v819_v3 }
   0x5   :  { %1898 = vst [vmem:[#allocation5_spill] sm:$0xff] %v829_v6  ;;  %v854_v12 = vmul.u32 4, %v332_v4  ;;  %v336_v13 = vadd.s32 1, %v332_v4  ;;  %v859_v14 = vld [vmem:[%s1806_s0 + $0x41] sm:$0x1]  ;;  %vm391_vm10 = vcmask 1045509  }
   0x6   :  { %1899 = vst [vmem:[#allocation6_spill] sm:$0xff] %v834_v7  ;;  %v864_v15 = vld [vmem:[%s1806_s0 + $0x45] sm:$0x1]  ;;  %v869_v16 = vld [vmem:[%s1806_s0 + $0x49] sm:$0x1]  ;;  %v120_v18 = vadd.f32 %v859_v14, %v812_v1  ;;  %vm394_vm11 = vcmask 1046534  }
   0x7   :  { %1900 = vst [vmem:[#allocation7_spill] sm:$0xff] %v839_v8  ;;  %v874_v17 = vld [vmem:[%s1806_s0 + $0x4d] sm:$0x1]  ;;  %vm335_vm1 = vcmp.ge.s32.totalorder %v852_v11, %v854_v12  ;;  %v337_v19 = vmul.u32 4, %v336_v13  ;;  %vm334_vm2 = vcmp.ge.s32.totalorder %v819_v3, %v854_v12  ;;  %v885_v20 = vld [vmem:[%s1806_s0 + $0x51] sm:$0x1]  ;;  %v121_v22 = vadd.f32 %v864_v15, %v817_v2 }
   0x8   :  { %1901 = vst [vmem:[#allocation8_spill] sm:$0xff] %v844_v9  ;;  %v890_v21 = vld [vmem:[%s1806_s0 + $0x55] sm:$0x1]  ;;  %v897_v23 = vld [vmem:[%s1806_s0 + $0x59] sm:$0x1]  ;;  %v122_v25 = vadd.f32 %v869_v16, %v824_v5  ;;  %v123_v26 = vadd.f32 %v874_v17, %v829_v6  ;;  %v124_v27 = vadd.f32 %v885_v20, %v834_v7  ;;  %vm397_vm12 = vcmask 1047559  }
   0x9   :  { %1902 = vst [vmem:[#allocation9_spill] sm:$0xff] %v849_v10  ;;  %v902_v24 = vld [vmem:[%s1806_s0 + $0x5d] sm:$0x1]  ;;  %v125_v28 = vadd.f32 %v890_v21, %v839_v8  ;;  %v915_v29 = vld [vmem:[%s1806_s0 + $0x42] sm:$0x1]  ;;  %vm339_vm5 = vcmp.lt.s32.totalorder %v852_v11, %v337_v19  ;;  %vm919_vm6 = vcmp.lt.s32.totalorder %v819_v3, %v337_v19  ;;  %v126_v31 = vadd.f32 %v897_v23, %v844_v9 }
   0xa   :  { %1903 = vst [vmem:[#allocation10_spill] sm:$0xff] %v859_v14  ;;  %v127_v32 = vadd.f32 %v902_v24, %v849_v10  ;;  %v930_v33 = vld [vmem:[%s1806_s0 + $0x46] sm:$0x1]  ;;  %v935_v34 = vld [vmem:[%s1806_s0 + $0x4a] sm:$0x1]  ;;  %vm945_vm7 = vmand %vm335_vm1, %vm339_vm5  ;;  %v216_v39 = vadd.f32 %v915_v29, %v120_v18  ;;  %vm441_vm13 = vcmask 130048   ;;  %vm480_vm14 = vcmp.eq.s32.totalorder %v852_v11, %v854_v12 }
   0xb   :  { %1904 = vst [vmem:[#allocation11_spill] sm:$0xff] %v864_v15  ;;  %v940_v35 = vld [vmem:[%s1806_s0 + $0x4e] sm:$0x1]  ;;  %v952_v37 = vld [vmem:[%s1806_s0 + $0x52] sm:$0x1]  ;;  %v217_v40 = vadd.f32 %v930_v33, %v121_v22  ;;  %v218_v41 = vadd.f32 %v935_v34, %v122_v25  ;;  %792 = vmatpush.msk.msra.mxu2 %vm945_vm7, %v1808_v43  ;;  %793 = vmatpush.msk.msra.mxu3 %vm945_vm7, %v1808_v43  ;;  %vm974_vm8 = vmand %vm334_vm2, %vm919_vm6 }
   0xc   :  { %1905 = vst [vmem:[#allocation12_spill] sm:$0xff] %v869_v16  ;;  %v957_v38 = vld [vmem:[%s1806_s0 + $0x56] sm:$0x1]  ;;  %v219_v42 = vadd.f32 %v940_v35, %v123_v26  ;;  %v981_v45 = vld [vmem:[%s1806_s0 + $0x5a] sm:$0x1]  ;;  %v220_v47 = vadd.f32 %v952_v37, %v124_v27  ;;  %791 = vmatpush.msk.msra.mxu1 %vm945_vm7, %v1808_v43  ;;  %753 = vmatpush.msk.msra.mxu0 %vm945_vm7, %v1808_v43 }
   0xd   :  { %1906 = vst [vmem:[#allocation13_spill] sm:$0xff] %v874_v17  ;;  %v986_v46 = vld [vmem:[%s1806_s0 + $0x5e] sm:$0x1]  ;;  %v221_v48 = vadd.f32 %v957_v38, %v125_v28  ;;  %v222_v49 = vadd.f32 %v981_v45, %v126_v31  ;;  %v995_v51 = vld [vmem:[%s1806_s0 + $0x43] sm:$0x1]  ;;  %795 = vmatpush.msk.msra.mxu2 %vm974_vm8, %v1808_v43  ;;  %796 = vmatpush.msk.msra.mxu3 %vm974_vm8, %v1808_v43 }
   0xe   :  { %1907 = vst [vmem:[#allocation14_spill] sm:$0xff] %v885_v20  ;;  %v223_v50 = vadd.f32 %v986_v46, %v127_v32  ;;  %v1000_v52 = vld [vmem:[%s1806_s0 + $0x47] sm:$0x1]  ;;  %v1005_v53 = vld [vmem:[%s1806_s0 + $0x4b] sm:$0x1]  ;;  %v312_v57 = vadd.f32 %v995_v51, %v216_v39  ;;  %794 = vmatpush.msk.msra.mxu1 %vm974_vm8, %v1808_v43  ;;  %754 = vmatpush.msk.msra.mxu0 %vm974_vm8, %v1808_v43 }
   0xf   :  { %1908 = vst [vmem:[#allocation15_spill] sm:$0xff] %v890_v21  ;;  %v1019_v54 = vld [vmem:[%s1806_s0 + $0x4f] sm:$0x1]  ;;  %v1024_v55 = vld [vmem:[%s1806_s0 + $0x53] sm:$0x1]  ;;  %v313_v58 = vadd.f32 %v1000_v52, %v217_v40  ;;  %v314_v59 = vadd.f32 %v1005_v53, %v218_v41  ;;  %v610_v41 = vadd.s32 1, %v854_v12  ;;  %vm479_vm6 = vcmp.eq.s32.totalorder %v819_v3, %v854_v12 }
  0x10   :  { %1909 = vst [vmem:[#allocation16_spill] sm:$0xff] %v897_v23  ;;  %v1029_v56 = vld [vmem:[%s1806_s0 + $0x57] sm:$0x1]  ;;  %v1040_v60 = vld [vmem:[%s1806_s0 + $0x5b] sm:$0x1]  ;;  %v315_v62 = vadd.f32 %v1019_v54, %v219_v42  ;;  %v316_v63 = vadd.f32 %v1024_v55, %v220_v47  ;;  %v650_v47 = vadd.s32 2, %v854_v12  ;;  %761 = vmatpush.msk.msrb.mxu1 %vm480_vm14, %v1808_v43 }
  0x11   :  { %1910 = vst [vmem:[#allocation17_spill] sm:$0xff] %v902_v24  ;;  %v1045_v61 = vld [vmem:[%s1806_s0 + $0x5f] sm:$0x1]  ;;  %v317_v0 = vadd.f32 %v1029_v56, %v221_v48  ;;  %v318_v4 = vadd.f32 %v1040_v60, %v222_v49  ;;  %v413_v18 = vrot.slane %v313_v58, 7  ;;  %v1061_v19 = vld [vmem:[%s1806_s0 + $0x60] sm:$0x1]  ;;  %vm612_vm15 = vcmp.eq.s32.totalorder %v852_v11, %v610_v41 }
  0x12   :  { %1911 = vst [vmem:[#allocation18_spill] sm:$0xff] %v915_v29  ;;  %v319_v13 = vadd.f32 %v1045_v61, %v223_v50  ;;  %v415_v22 = vrot.slane %v314_v59, 6  ;;  %v417_v25 = vrot.slane %v315_v62, 5  ;;  %v419_v26 = vrot.slane %v316_v63, 4  ;;  %v1066_v28 = vld [vmem:[%s1806_s0 + $0x64] sm:$0x1]  ;;  %769 = vmatpush.msk.msrb.mxu2 %vm612_vm15, %v1808_v43 }
  0x13   :  { %1914 = vst [vmem:[#allocation19_spill] sm:$0xff] %v930_v33  ;;  %v421_v27 = vrot.slane %v317_v0, 3  ;;  %v1071_v30 = vld [vmem:[%s1806_s0 + $0x68] sm:$0x1]  ;;  %v414_v31 = vsel %vm379_vm0, %v413_v18, %v312_v57  ;;  %v423_v32 = vrot.slane %v318_v4, 2  ;;  %vm652_vm1 = vcmp.eq.s32.totalorder %v852_v11, %v650_v47 }
  0x14   :  { %1915 = vst [vmem:[#allocation20_spill] sm:$0xff] %v935_v34  ;;  %v425_v36 = vrot.slane %v319_v13, 1  ;;  %v1077_v39 = vld [vmem:[%s1806_s0 + $0x6c] sm:$0x1]  ;;  %v416_v40 = vsel %vm382_vm3, %v415_v22, %v414_v31  ;;  %v1084_v42 = vld [vmem:[%s1806_s0 + $0x70] sm:$0x1]  ;;  %vm611_vm2 = vcmp.eq.s32.totalorder %v819_v3, %v610_v41  ;;  %vm651_vm5 = vcmp.eq.s32.totalorder %v819_v3, %v650_v47 }
  0x15   :  { %1916 = vst [vmem:[#allocation21_spill] sm:$0xff] %v940_v35  ;;  %v1089_v44 = vld [vmem:[%s1806_s0 + $0x74] sm:$0x1]  ;;  %v418_v48 = vsel %vm385_vm4, %v417_v25, %v416_v40  ;;  %v1098_v49 = vld [vmem:[%s1806_s0 + $0x78] sm:$0x1] }
  0x16   :  { %1919 = vst [vmem:[#allocation22_spill] sm:$0xff] %v952_v37  ;;  %v1103_v50 = vld [vmem:[%s1806_s0 + $0x7c] sm:$0x1]  ;;  %v1108_v57 = vld [vmem:[%s1806_s0 + $0x61] sm:$0x1]  ;;  %v420_v58 = vsel %vm388_vm9, %v419_v26, %v418_v48 }
  0x17   :  { %1920 = vst [vmem:[#allocation23_spill] sm:$0xff] %v957_v38  ;;  %v1116_v59 = vld [vmem:[%s1806_s0 + $0x65] sm:$0x1]  ;;  %v1121_v62 = vld [vmem:[%s1806_s0 + $0x69] sm:$0x1]  ;;  %v128_v0 = vadd.f32 %v1108_v57, %v1061_v19  ;;  %v422_v4 = vsel %vm391_vm10, %v421_v27, %v420_v58 }
  0x18   :  { %1923 = vst [vmem:[#allocation24_spill] sm:$0xff] %v981_v45  ;;  %v1126_v63 = vld [vmem:[%s1806_s0 + $0x6d] sm:$0x1]  ;;  %v1136_v13 = vld [vmem:[%s1806_s0 + $0x71] sm:$0x1]  ;;  %v129_v25 = vadd.f32 %v1116_v59, %v1066_v28  ;;  %v130_v26 = vadd.f32 %v1121_v62, %v1071_v30  ;;  %v424_v31 = vsel %vm394_vm11, %v423_v32, %v422_v4  ;;  %v1951_v4 = vmov 1.0  }
  0x19   :  { %1924 = vst [vmem:[#allocation25_spill] sm:$0xff] %v986_v46  ;;  %v1141_v18 = vld [vmem:[%s1806_s0 + $0x75] sm:$0x1]  ;;  %v1146_v22 = vld [vmem:[%s1806_s0 + $0x79] sm:$0x1]  ;;  %v131_v27 = vadd.f32 %v1126_v63, %v1077_v39  ;;  %v132_v48 = vadd.f32 %v1136_v13, %v1084_v42  ;;  %777 = vmatpush.msk.msrb.mxu3 %vm652_vm1, %v1951_v4  ;;  %770 = vmatpush.msk.msrb.mxu2 %vm611_vm2, %v1951_v4 }
  0x1a   :  { %1925 = vst [vmem:[#allocation26_spill] sm:$0xff] %v995_v51  ;;  %v1158_v40 = vld [vmem:[%s1806_s0 + $0x7d] sm:$0x1]  ;;  %v133_v58 = vadd.f32 %v1141_v18, %v1089_v44  ;;  %v134_v43 = vadd.f32 %v1146_v22, %v1098_v49  ;;  %v1174_v32 = vld [vmem:[%s1806_s0 + $0x66] sm:$0x1]  ;;  %762 = vmatpush.msk.msrb.mxu1 %vm479_vm6, %v1951_v4 }
  0x1b   :  { %1926 = vst [vmem:[#allocation27_spill] sm:$0xff] %v1000_v52  ;;  %v1235_v41 = vld [vmem:[%s1806_s0 + $0x6b] sm:$0x1]  ;;  %778 = vmatpush.msk.msrb.mxu3 %vm651_vm5, %v1951_v4  ;;  %v1408_v52 = vld [vmem:[%s1806_s0 + $0x36] sm:$0x1] }
  0x1c   :  { %1927 = vst [vmem:[#allocation28_spill] sm:$0xff] %v1005_v53  ;;  %v1413_v51 = vld [vmem:[%s1806_s0 + $0x3a] sm:$0x1]  ;;  %v1418_v46 = vld [vmem:[%s1806_s0 + $0x3e] sm:$0x1] }
  0x1d   :  { %1928 = vst [vmem:[#allocation29_spill] sm:$0xff] %v1019_v54  ;;  %v1400_v54 = vld [vmem:[%s1806_s0 + $0x32] sm:$0x1]  ;;  %v1430_v37 = vld [vmem:[%s1806_s0 + $0x23] sm:$0x1] }
  0x1e   :  { %1929 = vst [vmem:[#allocation30_spill] sm:$0xff] %v1024_v55  ;;  %v1395_v55 = vld [vmem:[%s1806_s0 + $0x2e] sm:$0x1]  ;;  %v1467_v34 = vld [vmem:[%s1806_s0 + $0x3b] sm:$0x1] }
  0x1f   :  { %1930 = vst [vmem:[#allocation31_spill] sm:$0xff] %v1029_v56  ;;  %v1390_v56 = vld [vmem:[%s1806_s0 + $0x2a] sm:$0x1]  ;;  %v1472_v33 = vld [vmem:[%s1806_s0 + $0x3f] sm:$0x1] }
  0x20   :  { %1931 = vst [vmem:[#allocation32_spill] sm:$0xff] %v1040_v60  ;;  %v1505_v20 = vld [vmem:[%s1806_s0 + $0x10] sm:$0x1]  ;;  %v45_v17 = vld [vmem:[%s1806_s0 + $0x15] sm:$0x1] }
  0x21   :  { %1932 = vst [vmem:[#allocation33_spill] sm:$0xff] %v1045_v61  ;;  %v1377_v61 = vld [vmem:[%s1806_s0 + $0x22] sm:$0x1]  ;;  %v137_v14 = vld [vmem:[%s1806_s0 + $0x6] sm:$0x1] }
  0x22   :  { %1933 = vst [vmem:[#allocation34_spill] sm:$0xff] %v1061_v19  ;;  %v136_v1 = vld [vmem:[%s1806_s0 + $0x2] sm:$0x1] }
  0x23   :  { %1934 = vst [vmem:[#allocation35_spill] sm:$0xff] %v1066_v28  ;;  %v1366_v28 = vld [vmem:[%s1806_s0 + $0x3d] sm:$0x1] }
  0x24   :  { %1935 = vst [vmem:[#allocation36_spill] sm:$0xff] %v1071_v30  ;;  %v1225_v30 = vld [vmem:[%s1806_s0 + $0x63] sm:$0x1] }
  0x25   :  { %1936 = vst [vmem:[#allocation37_spill] sm:$0xff] %v1077_v39  ;;  %v1169_v39 = vld [vmem:[%s1806_s0 + $0x62] sm:$0x1] }
  0x26   :  { %1937 = vst [vmem:[#allocation38_spill] sm:$0xff] %v1084_v42  ;;  %v426_v42 = vsel %vm397_vm12, %v425_v36, %v424_v31  ;;  %v224_v36 = vadd.f32 %v1169_v39, %v128_v0  ;;  %v225_v31 = vadd.f32 %v1174_v32, %v129_v25 }
  0x27   :  { %1938 = vst [vmem:[#allocation39_spill] sm:$0xff] %v1089_v44  ;;  %v135_v44 = vadd.f32 %v1158_v40, %v1103_v50  ;;  %757 = vmatmul.msk.f32.vlgmr.msra.gmra.mxu2 %vm441_vm13, %v426_v42 }
  0x28   :  { %1939 = vst [vmem:[#allocation40_spill] sm:$0xff] %v1098_v49  ;;  %v1185_v49 = vld [vmem:[%s1806_s0 + $0x6a] sm:$0x1] }
  0x29   :  { %1940 = vst [vmem:[#allocation41_spill] sm:$0xff] %v1103_v50  ;;  %v1203_v50 = vld [vmem:[%s1806_s0 + $0x76] sm:$0x1]  ;;  %v226_v0 = vadd.f32 %v1185_v49, %v130_v26  ;;  %v1230_v26 = vld [vmem:[%s1806_s0 + $0x67] sm:$0x1] }
  0x2a   :  { %1941 = vst [vmem:[#allocation42_spill] sm:$0xff] %v1108_v57 }
  0x2b   :  { %1942 = vst [vmem:[#allocation43_spill] sm:$0xff] %v1116_v59  ;;  %v322_v47 = vadd.f32 %v1235_v41, %v226_v0  ;;  %v1274_v0 = vld [vmem:[%s1806_s0 + $0x20] sm:$0x1] }
  0x2c   :  { %1943 = vst [vmem:[#allocation44_spill] sm:$0xff] %v1121_v62 }
  0x2d   :  { %1944 = vst [vmem:[#allocation45_spill] sm:$0xff] %v1126_v63 }
  0x2e   :  { %1945 = vst [vmem:[#allocation46_spill] sm:$0xff] %v1136_v13  ;;  %v1213_v13 = vld [vmem:[%s1806_s0 + $0x7e] sm:$0x1] }
  0x2f   :  { %1946 = vst [vmem:[#allocation47_spill] sm:$0xff] %v1141_v18  ;;  %v1195_v18 = vld [vmem:[%s1806_s0 + $0x72] sm:$0x1]  ;;  %v231_v63 = vadd.f32 %v1213_v13, %v135_v44  ;;  %v1247_v44 = vld [vmem:[%s1806_s0 + $0x73] sm:$0x1] }
  0x30   :  { %1947 = vst [vmem:[#allocation48_spill] sm:$0xff] %v1146_v22  ;;  %v1190_v22 = vld [vmem:[%s1806_s0 + $0x6e] sm:$0x1]  ;;  %v228_v42 = vadd.f32 %v1195_v18, %v132_v48  ;;  %v320_v48 = vadd.f32 %v1225_v30, %v224_v36 }
  0x31   :  { %1948 = vst [vmem:[#allocation49_spill] sm:$0xff] %v1158_v40  ;;  %v1208_v40 = vld [vmem:[%s1806_s0 + $0x7a] sm:$0x1]  ;;  %v227_v25 = vadd.f32 %v1190_v22, %v131_v27  ;;  %v1252_v27 = vld [vmem:[%s1806_s0 + $0x77] sm:$0x1] }
  0x32   :  { %1949 = vst [vmem:[#allocation50_spill] sm:$0xff] %v1169_v39  ;;  %v230_v39 = vadd.f32 %v1208_v40, %v134_v43  ;;  %v1242_v43 = vld [vmem:[%s1806_s0 + $0x6f] sm:$0x1]  ;;  %v324_v36 = vadd.f32 %v1247_v44, %v228_v42 }
  0x33   :  { %1950 = vst [vmem:[#allocation51_spill] sm:$0xff] %v1174_v32  ;;  %v229_v32 = vadd.f32 %v1203_v50, %v133_v58  ;;  %v321_v58 = vadd.f32 %v1230_v26, %v225_v31 }
  0x34   :  { %1952 = vst [vmem:[#allocation52_spill] sm:$0xff] %v1185_v49  ;;  %v433_v42 = vrot.slane %v324_v36, 4  ;;  %v1354_v49 = vld [vmem:[%s1806_s0 + $0x39] sm:$0x1] }
  0x35   :  { %1953 = vst [vmem:[#allocation53_spill] sm:$0xff] %v1190_v22  ;;  %v325_v31 = vadd.f32 %v1252_v27, %v229_v32  ;;  %v1281_v22 = vld [vmem:[%s1806_s0 + $0x24] sm:$0x1]  ;;  %v1286_v32 = vld [vmem:[%s1806_s0 + $0x28] sm:$0x1] }
  0x36   :  { %1954 = vst [vmem:[#allocation54_spill] sm:$0xff] %v1195_v18  ;;  %v429_v18 = vrot.slane %v322_v47, 6 }
  0x37   :  { %1955 = vst [vmem:[#allocation55_spill] sm:$0xff] %v1203_v50  ;;  %v323_v50 = vadd.f32 %v1242_v43, %v227_v25 }
  0x38   :  { %1956 = vst [vmem:[#allocation56_spill] sm:$0xff] %v1208_v40  ;;  %v1266_v40 = vld [vmem:[%s1806_s0 + $0x7f] sm:$0x1] }
  0x39   :  { %1957 = vst [vmem:[#allocation57_spill] sm:$0xff] %v1213_v13  ;;  %v1261_v13 = vld [vmem:[%s1806_s0 + $0x7b] sm:$0x1]  ;;  %v431_v25 = vrot.slane %v323_v50, 5  ;;  %v1302_v50 = vld [vmem:[%s1806_s0 + $0x34] sm:$0x1] }
  0x3a   :  { %1958 = vst [vmem:[#allocation58_spill] sm:$0xff] %v1225_v30  ;;  %v427_v30 = vrot.slane %v321_v58, 7 }
  0x3b   :  { %1959 = vst [vmem:[#allocation59_spill] sm:$0xff] %v1230_v26  ;;  %v327_v26 = vadd.f32 %v1266_v40, %v231_v63 }
  0x3c   :  { %1960 = vst [vmem:[#allocation60_spill] sm:$0xff] %v1235_v41  ;;  %v326_v41 = vadd.f32 %v1261_v13, %v230_v39  ;;  %v1291_v39 = vld [vmem:[%s1806_s0 + $0x2c] sm:$0x1]  ;;  %v428_v63 = vsel %vm379_vm0, %v427_v30, %v320_v48  ;;  %v1313_v30 = vld [vmem:[%s1806_s0 + $0x3c] sm:$0x1] }
  0x3d   :  { %1961 = vst [vmem:[#allocation61_spill] sm:$0xff] %v1242_v43  ;;  %v439_v47 = vrot.slane %v327_v26, 1  ;;  %v430_v36 = vsel %vm382_vm3, %v429_v18, %v428_v63  ;;  %v1318_v26 = vld [vmem:[%s1806_s0 + $0x21] sm:$0x1]  ;;  %v1324_v18 = vld [vmem:[%s1806_s0 + $0x25] sm:$0x1]  ;;  %v119_v60 = vadd.f32 %v1366_v28, %v1313_v30 }
  0x3e   :  { %1962 = vst [vmem:[#allocation62_spill] sm:$0xff] %v1247_v44  ;;  %v437_v58 = vrot.slane %v326_v41, 2  ;;  %v432_v41 = vsel %vm385_vm4, %v431_v25, %v430_v36  ;;  %v1329_v48 = vld [vmem:[%s1806_s0 + $0x29] sm:$0x1]  ;;  %v1334_v63 = vld [vmem:[%s1806_s0 + $0x2d] sm:$0x1]  ;;  %v113_v25 = vadd.f32 %v1324_v18, %v1281_v22 }
  0x3f   :  { %1963 = vst [vmem:[#allocation63_spill] sm:$0xff] %v1252_v27  ;;  %v435_v27 = vrot.slane %v325_v31, 3  ;;  %v1308_v31 = vld [vmem:[%s1806_s0 + $0x38] sm:$0x1]  ;;  %v434_v36 = vsel %vm388_vm9, %v433_v42, %v432_v41  ;;  %v1344_v44 = vld [vmem:[%s1806_s0 + $0x31] sm:$0x1]  ;;  %v114_v42 = vadd.f32 %v1329_v48, %v1286_v32  ;;  %v115_v41 = vadd.f32 %v1334_v63, %v1291_v39 }
  0x40   :  { %1964 = vst [vmem:[#allocation64_spill] sm:$0xff] %v1261_v13  ;;  %v112_v13 = vadd.f32 %v1318_v26, %v1274_v0  ;;  %v1349_v43 = vld [vmem:[%s1806_s0 + $0x35] sm:$0x1]  ;;  %v118_v57 = vadd.f32 %v1354_v49, %v1308_v31  ;;  %v215_v38 = vadd.f32 %v1418_v46, %v119_v60  ;;  %v1447_v60 = vld [vmem:[%s1806_s0 + $0x2f] sm:$0x1] }
  0x41   :  { %1965 = vst [vmem:[#allocation65_spill] sm:$0xff] %v1266_v40  ;;  %v1297_v40 = vld [vmem:[%s1806_s0 + $0x30] sm:$0x1]  ;;  %v436_v62 = vsel %vm391_vm10, %v435_v27, %v434_v36  ;;  %v117_v19 = vadd.f32 %v1349_v43, %v1302_v50  ;;  %v1382_v27 = vld [vmem:[%s1806_s0 + $0x26] sm:$0x1] }
  0x42   :  { %1966 = vst [vmem:[#allocation66_spill] sm:$0xff] %v1286_v32  ;;  %v116_v59 = vadd.f32 %v1344_v44, %v1297_v40  ;;  %v438_v36 = vsel %vm394_vm11, %v437_v58, %v436_v62  ;;  %v208_v62 = vadd.f32 %v1377_v61, %v112_v13  ;;  %v209_v58 = vadd.f32 %v1382_v27, %v113_v25 }
  0x43   :  { %1967 = vst [vmem:[#allocation67_spill] sm:$0xff] %v1291_v39  ;;  %v440_v53 = vsel %vm397_vm12, %v439_v47, %v438_v36  ;;  %v210_v13 = vadd.f32 %v1390_v56, %v114_v42  ;;  %v211_v25 = vadd.f32 %v1395_v55, %v115_v41  ;;  %v213_v36 = vadd.f32 %v1408_v52, %v117_v19  ;;  %v1435_v42 = vld [vmem:[%s1806_s0 + $0x27] sm:$0x1] }
  0x44   :  { %1968 = vst [vmem:[#allocation68_spill] sm:$0xff] %v1297_v40  ;;  %v212_v47 = vadd.f32 %v1400_v54, %v116_v59  ;;  %758 = vmatmul.msk.f32.vlgmr.msra.gmra.mxu3 %vm441_vm13, %v440_v53  ;;  %v214_v45 = vadd.f32 %v1413_v51, %v118_v57  ;;  %v1440_v53 = vld [vmem:[%s1806_s0 + $0x2b] sm:$0x1]  ;;  %v1452_v57 = vld [vmem:[%s1806_s0 + $0x33] sm:$0x1]  ;;  %v304_v41 = vadd.f32 %v1430_v37, %v208_v62 }
  0x45   :  { %1969 = vst [vmem:[#allocation69_spill] sm:$0xff] %v1302_v50  ;;  %v1457_v59 = vld [vmem:[%s1806_s0 + $0x37] sm:$0x1]  ;;  %v305_v35 = vadd.f32 %v1435_v42, %v209_v58  ;;  %v306_v19 = vadd.f32 %v1440_v53, %v210_v13  ;;  %v307_v29 = vadd.f32 %v1447_v60, %v211_v25  ;;  %v8_v13 = vld [vmem:[%s1806_s0] sm:$0x1]  ;;  %v311_v9 = vadd.f32 %v1472_v33, %v215_v38 }
  0x46   :  { %1970 = vst [vmem:[#allocation70_spill] sm:$0xff] %v1329_v48  ;;  %v308_v62 = vadd.f32 %v1452_v57, %v212_v47  ;;  %v309_v58 = vadd.f32 %v1457_v59, %v213_v36  ;;  %v310_v24 = vadd.f32 %v1467_v34, %v214_v45  ;;  %v1488_v25 = vld [vmem:[%s1806_s0 + $0x4] sm:$0x1]  ;;  %v1493_v47 = vld [vmem:[%s1806_s0 + $0x8] sm:$0x1] }
  0x47   :  { %1971 = vst [vmem:[#allocation71_spill] sm:$0xff] %v1334_v63  ;;  %v399_v23 = vrot.slane %v305_v35, 7  ;;  %v401_v8 = vrot.slane %v306_v19, 6  ;;  %v403_v36 = vrot.slane %v307_v29, 5  ;;  %v1498_v45 = vld [vmem:[%s1806_s0 + $0xc] sm:$0x1] }
  0x48   :  { %1972 = vst [vmem:[#allocation72_spill] sm:$0xff] %v1344_v44  ;;  %v405_v21 = vrot.slane %v308_v62, 4  ;;  %v407_v7 = vrot.slane %v309_v58, 3  ;;  %v690_v35 = vadd.s32 3, %v854_v12  ;;  %v409_v19 = vrot.slane %v310_v24, 2 }
  0x49   :  { %1973 = vst [vmem:[#allocation73_spill] sm:$0xff] %v1349_v43  ;;  %v400_v38 = vsel %vm379_vm0, %v399_v23, %v304_v41  ;;  %v411_v10 = vrot.slane %v311_v9, 1  ;;  %v1510_v29 = vld [vmem:[%s1806_s0 + $0x14] sm:$0x1]  ;;  %v1518_v12 = vld [vmem:[%s1806_s0 + $0x18] sm:$0x1] }
  0x4a   :  { %1974 = vst [vmem:[#allocation74_spill] sm:$0xff] %v1395_v55  ;;  %v402_v58 = vsel %vm382_vm3, %v401_v8, %v400_v38  ;;  %v1523_v9 = vld [vmem:[%s1806_s0 + $0x1c] sm:$0x1]  ;;  %v40_v23 = vld [vmem:[%s1806_s0 + $0x1] sm:$0x1]  ;;  %vm692_vm7 = vcmp.eq.s32.totalorder %v852_v11, %v690_v35  ;;  %vm691_vm8 = vcmp.eq.s32.totalorder %v819_v3, %v690_v35  ;;  %v77_v2 = vmax.f32 %v1510_v29, %v45_v17 }
  0x4b   :  { %1975 = vst [vmem:[#allocation75_spill] sm:$0xff] %v1400_v54  ;;  %v404_v24 = vsel %vm385_vm4, %v403_v36, %v402_v58  ;;  %v41_v41 = vld [vmem:[%s1806_s0 + $0x5] sm:$0x1]  ;;  %v42_v38 = vld [vmem:[%s1806_s0 + $0x9] sm:$0x1]  ;;  %v72_v11 = vmax.f32 %v8_v13, %v40_v23  ;;  %v1542_v6 = vadd.f32 %v40_v23, %v8_v13  ;;  %785 = vmatpush.msk.msrb.mxu0 %vm692_vm7, %v1951_v4 }
  0x4c   :  { %1976 = vst [vmem:[#allocation76_spill] sm:$0xff] %v1408_v52  ;;  %v43_v62 = vld [vmem:[%s1806_s0 + $0xd] sm:$0x1]  ;;  %v406_v58 = vsel %vm388_vm9, %v405_v21, %v404_v24  ;;  %v44_v8 = vld [vmem:[%s1806_s0 + $0x11] sm:$0x1]  ;;  %v73_v23 = vmax.f32 %v1488_v25, %v41_v41  ;;  %v74_v5 = vmax.f32 %v1493_v47, %v42_v38  ;;  %v109_v32 = vadd.f32 %v45_v17, %v1510_v29 }
  0x4d   :  { %1977 = vst [vmem:[#allocation77_spill] sm:$0xff] %v1413_v51  ;;  %v46_v13 = vld [vmem:[%s1806_s0 + $0x19] sm:$0x1]  ;;  %v75_v36 = vmax.f32 %v1498_v45, %v43_v62  ;;  %v408_v21 = vsel %vm391_vm10, %v407_v7, %v406_v58  ;;  %v47_v24 = vld [vmem:[%s1806_s0 + $0x1d] sm:$0x1]  ;;  %v76_v16 = vmax.f32 %v1505_v20, %v44_v8  ;;  %786 = vmatpush.msk.msrb.mxu0 %vm691_vm8, %v1951_v4 }
  0x4e   :  { %1978 = vst [vmem:[#allocation78_spill] sm:$0xff] %v1418_v46  ;;  %v78_v15 = vmax.f32 %v1518_v12, %v46_v13  ;;  %v410_v7 = vsel %vm394_vm11, %v409_v19, %v408_v21  ;;  %v79_v58 = vmax.f32 %v1523_v9, %v47_v24  ;;  %v141_v4 = vld [vmem:[%s1806_s0 + $0x16] sm:$0x1]  ;;  %v142_v35 = vld [vmem:[%s1806_s0 + $0x1a] sm:$0x1]  ;;  %v106_v51 = vadd.f32 %v42_v38, %v1493_v47 }
  0x4f   :  { %1979 = vst [vmem:[#allocation79_spill] sm:$0xff] %v1430_v37  ;;  %v412_v3 = vsel %vm397_vm12, %v411_v10, %v410_v7  ;;  %v143_v19 = vld [vmem:[%s1806_s0 + $0x1e] sm:$0x1]  ;;  %v232_v7 = vld [vmem:[%s1806_s0 + $0x3] sm:$0x1]  ;;  %v107_v44 = vadd.f32 %v43_v62, %v1498_v45  ;;  %v108_v38 = vadd.f32 %v44_v8, %v1505_v20  ;;  %v111_v45 = vadd.f32 %v47_v24, %v1523_v9 }
  0x50   :  { %1980 = vst [vmem:[#allocation80_spill] sm:$0xff] %v1435_v42  ;;  %756 = vmatmul.msk.f32.vlgmr.msra.gmra.mxu1 %vm441_vm13, %v412_v3  ;;  %v175_v10 = vmax.f32 %v79_v58, %v143_v19  ;;  %v233_v37 = vld [vmem:[%s1806_s0 + $0x7] sm:$0x1]  ;;  %v234_v46 = vld [vmem:[%s1806_s0 + $0xb] sm:$0x1]  ;;  %v200_v62 = vadd.f32 %v136_v1, %v1542_v6  ;;  %v87_v24 = vmax.f32 %v1313_v30, %v1366_v28 }
  0x51   :  { %1981 = vst [vmem:[#allocation81_spill] sm:$0xff] %v1440_v53  ;;  %v207_v29 = vadd.f32 %v143_v19, %v111_v45  ;;  %v1988_v19 = vmax.f32 %v1281_v22, %v1324_v18  ;;  %v1994_v28 = vld [vmem:[#allocation71_spill] sm:$0xff] }
  0x52   :  { %1982 = vst [vmem:[#allocation82_spill] sm:$0xff] %v1447_v60  ;;  %v169_v60 = vmax.f32 %v73_v23, %v137_v14  ;;  %v174_v23 = vmax.f32 %v78_v15, %v142_v35  ;;  %v236_v15 = vld [vmem:[%s1806_s0 + $0x13] sm:$0x1] }
  0x53   :  { %1983 = vst [vmem:[#allocation83_spill] sm:$0xff] %v1452_v57  ;;  %v168_v57 = vmax.f32 %v72_v11, %v136_v1  ;;  %v173_v11 = vmax.f32 %v77_v2, %v141_v4  ;;  %v235_v2 = vld [vmem:[%s1806_s0 + $0xf] sm:$0x1]  ;;  %v2000_v18 = vld [vmem:[#allocation76_spill] sm:$0xff] }
  0x54   :  { %1984 = vst [vmem:[#allocation84_spill] sm:$0xff] %v1457_v59  ;;  %v140_v59 = vld [vmem:[%s1806_s0 + $0x12] sm:$0x1]  ;;  %v265_v58 = vmax.f32 %v169_v60, %v233_v37 }
  0x55   :  { %1985 = vst [vmem:[#allocation85_spill] sm:$0xff] %v1467_v34  ;;  %v139_v34 = vld [vmem:[%s1806_s0 + $0xe] sm:$0x1]  ;;  %v172_v42 = vmax.f32 %v76_v16, %v140_v59  ;;  %v237_v16 = vld [vmem:[%s1806_s0 + $0x17] sm:$0x1]  ;;  %v204_v8 = vadd.f32 %v140_v59, %v108_v38 }
  0x56   :  { %1986 = vst [vmem:[#allocation86_spill] sm:$0xff] %v1472_v33  ;;  %v138_v33 = vld [vmem:[%s1806_s0 + $0xa] sm:$0x1]  ;;  %v171_v53 = vmax.f32 %v75_v36, %v139_v34  ;;  %v264_v36 = vmax.f32 %v168_v57, %v232_v7  ;;  %v269_v52 = vmax.f32 %v173_v11, %v237_v16  ;;  %v517_v57 = vrot.slane %v265_v58, 7 }
  0x57   :  { %v170_v21 = vmax.f32 %v74_v5, %v138_v33  ;;  %v105_v5 = vadd.f32 %v41_v41, %v1488_v25  ;;  %v238_v25 = vld [vmem:[%s1806_s0 + $0x1b] sm:$0x1]  ;;  %v239_v41 = vld [vmem:[%s1806_s0 + $0x1f] sm:$0x1]  ;;  %v268_v50 = vmax.f32 %v172_v42, %v236_v15  ;;  %v203_v11 = vadd.f32 %v139_v34, %v107_v44  ;;  %v1996_v58 = vld [vmem:[#allocation75_spill] sm:$0xff] }
  0x58   :  { %v267_v43 = vmax.f32 %v171_v53, %v235_v2  ;;  %v270_v40 = vmax.f32 %v174_v23, %v238_v25  ;;  %v271_v54 = vmax.f32 %v175_v10, %v239_v41  ;;  %v525_v47 = vrot.slane %v269_v52, 3  ;;  %v2007_v45 = vld [vmem:[#allocation80_spill] sm:$0xff] }
  0x59   :  { %v266_v3 = vmax.f32 %v170_v21, %v234_v46  ;;  %v523_v63 = vrot.slane %v268_v50, 4  ;;  %v518_v39 = vsel %vm379_vm0, %v517_v57, %v264_v36  ;;  %v110_v53 = vadd.f32 %v46_v13, %v1518_v12 }
  0x5a   :  { %v521_v21 = vrot.slane %v267_v43, 5  ;;  %v527_v55 = vrot.slane %v270_v40, 2  ;;  %v529_v48 = vrot.slane %v271_v54, 1  ;;  %v201_v50 = vadd.f32 %v137_v14, %v105_v5  ;;  %v1989_v5 = vld [vmem:[#allocation66_spill] sm:$0xff] }
  0x5b   :  { %v519_v60 = vrot.slane %v266_v3, 6  ;;  %v202_v52 = vadd.f32 %v138_v33, %v106_v51  ;;  %v205_v40 = vadd.f32 %v141_v4, %v109_v32  ;;  %v206_v54 = vadd.f32 %v142_v35, %v110_v53 }
  0x5c   :  { %v297_v23 = vadd.f32 %v233_v37, %v201_v50  ;;  %v299_v13 = vadd.f32 %v235_v2, %v203_v11  ;;  %v300_v1 = vadd.f32 %v236_v15, %v204_v8  ;;  %v303_v34 = vadd.f32 %v239_v41, %v207_v29  ;;  %v1992_v15 = vld [vmem:[#allocation74_spill] sm:$0xff]  ;;  %v2010_v8 = vld [vmem:[#allocation83_spill] sm:$0xff] }
  0x5d   :  { %v520_v42 = vsel %vm382_vm3, %v519_v60, %v518_v39  ;;  %v296_v39 = vadd.f32 %v232_v7, %v200_v62  ;;  %v298_v9 = vadd.f32 %v234_v46, %v202_v52  ;;  %v301_v14 = vadd.f32 %v237_v16, %v205_v40  ;;  %v1993_v16 = vld [vmem:[#allocation67_spill] sm:$0xff]  ;;  %v2004_v60 = vld [vmem:[#allocation77_spill] sm:$0xff]  ;;  %v2009_v11 = vld [vmem:[#allocation82_spill] sm:$0xff] }
  0x5e   :  { %v522_v43 = vsel %vm385_vm4, %v521_v21, %v520_v42  ;;  %v302_v33 = vadd.f32 %v238_v25, %v206_v54  ;;  %v378_v51 = vrot.slane %v297_v23, 7  ;;  %v384_v32 = vrot.slane %v299_v13, 5  ;;  %v2002_v25 = vld [vmem:[#allocation73_spill] sm:$0xff]  ;;  %v2006_v42 = vld [vmem:[#allocation79_spill] sm:$0xff]  ;;  %v2011_v54 = vld [vmem:[#allocation84_spill] sm:$0xff] }
  0x5f   :  { %v524_v20 = vsel %vm388_vm9, %v523_v63, %v522_v43  ;;  %v381_v44 = vrot.slane %v298_v9, 6  ;;  %v387_v63 = vrot.slane %v300_v1, 4  ;;  %v390_v37 = vrot.slane %v301_v14, 3  ;;  %v2008_v43 = vld [vmem:[#allocation81_spill] sm:$0xff] }
  0x60   :  { %v526_v17 = vsel %vm391_vm10, %v525_v47, %v524_v20  ;;  %v393_v46 = vrot.slane %v302_v33, 2  ;;  %v380_v59 = vsel %vm379_vm0, %v378_v51, %v296_v39  ;;  %v1987_v4 = vmax.f32 %v1274_v0, %v1318_v26  ;;  %v1997_v0 = vld [vmem:[#allocation68_spill] sm:$0xff]  ;;  %v2012_v39 = vld [vmem:[#allocation85_spill] sm:$0xff] }
  0x61   :  { %v528_v12 = vsel %vm394_vm11, %v527_v55, %v526_v17  ;;  %v396_v55 = vrot.slane %v303_v34, 1  ;;  %v177_v10 = vmax.f32 %v1988_v19, %v1382_v27  ;;  %v383_v7 = vsel %vm382_vm3, %v381_v44, %v380_v59  ;;  %v2001_v27 = vld [vmem:[#allocation69_spill] sm:$0xff]  ;;  %v2018_v19 = vld [vmem:[#allocation12_spill] sm:$0xff] }
  0x62   :  { %v1637_v6 = vsel %vm397_vm12, %v529_v48, %v528_v12  ;;  %v86_v48 = vmax.f32 %v1308_v31, %v1354_v49  ;;  %v176_v35 = vmax.f32 %v1987_v4, %v1377_v61  ;;  %v1990_v49 = vld [vmem:[#allocation70_spill] sm:$0xff]  ;;  %v1995_v30 = vmax.f32 %v1993_v16, %v1994_v28  ;;  %v1998_v61 = vld [vmem:[#allocation72_spill] sm:$0xff]  ;;  %v2017_v4 = vld [vmem:[#allocation3_spill] sm:$0xff] }
  0x63   :  { %771 = vmatmul.msk.f32.vlgmr.msrb.gmra.mxu2 %vm441_vm13, %v1637_v6  ;;  %779 = vmatmul.msk.f32.vlgmr.msrb.gmra.mxu3 %vm441_vm13, %v1637_v6  ;;  %v1991_v31 = vmax.f32 %v1989_v5, %v1990_v49  ;;  %v1999_v26 = vmax.f32 %v1997_v0, %v1998_v61  ;;  %v386_v22 = vsel %vm385_vm4, %v384_v32, %v383_v7  ;;  %v2013_v12 = vld [vmem:[#allocation86_spill] sm:$0xff]  ;;  %v2020_v5 = vld [vmem:[#allocation13_spill] sm:$0xff]  ;;  %v2024_v28 = vld [vmem:[#allocation15_spill] sm:$0xff] }
  0x64   :  { %763 = vmatmul.msk.f32.vlgmr.msrb.gmra.mxu1 %vm441_vm13, %v1637_v6  ;;  %v179_v36 = vmax.f32 %v1995_v30, %v1992_v15  ;;  %v2003_v41 = vmax.f32 %v2001_v27, %v2002_v25  ;;  %v182_v21 = vmax.f32 %v86_v48, %v2004_v60  ;;  %v389_v38 = vsel %vm388_vm9, %v387_v63, %v386_v22  ;;  %v2015_v48 = vld [vmem:[#allocation2_spill] sm:$0xff]  ;;  %v2021_v49 = vld [vmem:[#allocation5_spill] sm:$0xff]  ;;  %v2025_v30 = vld [vmem:[#allocation7_spill] sm:$0xff] }
  0x65   :  { %v178_v2 = vmax.f32 %v1991_v31, %v1390_v56  ;;  %v180_v3 = vmax.f32 %v1999_v26, %v1996_v58  ;;  %v2005_v56 = vld [vmem:[#allocation78_spill] sm:$0xff]  ;;  %v272_v53 = vmax.f32 %v176_v35, %v2006_v42  ;;  %v273_v62 = vmax.f32 %v177_v10, %v2007_v45  ;;  %v2026_v0 = vld [vmem:[#allocation16_spill] sm:$0xff]  ;;  %v2029_v22 = vld [vmem:[#allocation9_spill] sm:$0xff] }
  0x66   :  { %v181_v57 = vmax.f32 %v2003_v41, %v2000_v18  ;;  %v183_v47 = vmax.f32 %v87_v24, %v2005_v56  ;;  %v392_v52 = vsel %vm391_vm10, %v390_v37, %v389_v38  ;;  %v275_v20 = vmax.f32 %v179_v36, %v2009_v11  ;;  %v2016_v24 = vld [vmem:[#allocation11_spill] sm:$0xff]  ;;  %v2023_v15 = vld [vmem:[#allocation6_spill] sm:$0xff]  ;;  %v2027_v61 = vld [vmem:[#allocation8_spill] sm:$0xff] }
  0x67   :  { %v274_v50 = vmax.f32 %v178_v2, %v2008_v43  ;;  %v276_v40 = vmax.f32 %v180_v3, %v2010_v8  ;;  %v395_v29 = vsel %vm394_vm11, %v393_v46, %v392_v52  ;;  %v278_v23 = vmax.f32 %v182_v21, %v2012_v39  ;;  %v2014_v46 = vld [vmem:[#allocation10_spill] sm:$0xff]  ;;  %v2028_v3 = vld [vmem:[#allocation17_spill] sm:$0xff]  ;;  %v2032_v21 = vld [vmem:[#allocation20_spill] sm:$0xff] }
  0x68   :  { %v277_v17 = vmax.f32 %v181_v57, %v2011_v54  ;;  %v279_v9 = vmax.f32 %v183_v47, %v2013_v12  ;;  %v531_v13 = vrot.slane %v273_v62, 7  ;;  %v398_v1 = vsel %vm397_vm12, %v396_v55, %v395_v29  ;;  %v2019_v55 = vld [vmem:[#allocation4_spill] sm:$0xff]  ;;  %v2022_v2 = vld [vmem:[#allocation14_spill] sm:$0xff]  ;;  %v2031_v57 = vld [vmem:[#allocation19_spill] sm:$0xff] }
  0x69   :  { %v533_v14 = vrot.slane %v274_v50, 6  ;;  %v535_v33 = vrot.slane %v275_v20, 5  ;;  %v537_v34 = vrot.slane %v276_v40, 4  ;;  %755 = vmatmul.msk.f32.vlgmr.msra.gmra.mxu0 %vm441_vm13, %v398_v1  ;;  %v541_v32 = vrot.slane %v278_v23, 2  ;;  %v2030_v27 = vld [vmem:[#allocation18_spill] sm:$0xff]  ;;  %v2033_v47 = vld [vmem:[#allocation21_spill] sm:$0xff] }
  0x6a   :  { %v532_v51 = vsel %vm379_vm0, %v531_v13, %v272_v53  ;;  %v539_v44 = vrot.slane %v277_v17, 3  ;;  %v543_v63 = vrot.slane %v279_v9, 1  ;;  %v88_v59 = vmax.f32 %v2015_v48, %v2014_v46  ;;  %v2034_v53 = vld [vmem:[#allocation22_spill] sm:$0xff]  ;;  %v2035_v62 = vld [vmem:[#allocation23_spill] sm:$0xff]  ;;  %v2036_v50 = vld [vmem:[#allocation24_spill] sm:$0xff] }
  0x6b   :  { %v534_v37 = vsel %vm382_vm3, %v533_v14, %v532_v51  ;;  %v89_v35 = vmax.f32 %v2017_v4, %v2016_v24  ;;  %v90_v10 = vmax.f32 %v2019_v55, %v2018_v19  ;;  %v91_v31 = vmax.f32 %v2021_v49, %v2020_v5  ;;  %v2037_v20 = vld [vmem:[#allocation25_spill] sm:$0xff]  ;;  %v2038_v40 = vld [vmem:[#allocation26_spill] sm:$0xff]  ;;  %v2039_v17 = vld [vmem:[#allocation27_spill] sm:$0xff] }
  0x6c   :  { %v536_v7 = vsel %vm385_vm4, %v535_v33, %v534_v37  ;;  %v92_v16 = vmax.f32 %v2023_v15, %v2022_v2  ;;  %v93_v36 = vmax.f32 %v2025_v30, %v2024_v28  ;;  %v94_v26 = vmax.f32 %v2027_v61, %v2026_v0  ;;  %v2040_v39 = vld [vmem:[#allocation28_spill] sm:$0xff]  ;;  %v2041_v12 = vld [vmem:[#allocation29_spill] sm:$0xff]  ;;  %v2042_v13 = vld [vmem:[#allocation30_spill] sm:$0xff] }
  0x6d   :  { %v538_v58 = vsel %vm388_vm9, %v537_v34, %v536_v7  ;;  %v95_v18 = vmax.f32 %v2029_v22, %v2028_v3  ;;  %v184_v25 = vmax.f32 %v88_v59, %v2030_v27  ;;  %v185_v60 = vmax.f32 %v89_v35, %v2031_v57  ;;  %v2043_v14 = vld [vmem:[#allocation31_spill] sm:$0xff]  ;;  %v2044_v34 = vld [vmem:[#allocation32_spill] sm:$0xff]  ;;  %v2046_v59 = vld [vmem:[#allocation42_spill] sm:$0xff] }
  0x6e   :  { %v540_v41 = vsel %vm391_vm10, %v539_v44, %v538_v58  ;;  %v186_v56 = vmax.f32 %v90_v10, %v2032_v21  ;;  %v187_v38 = vmax.f32 %v91_v31, %v2033_v47  ;;  %v188_v45 = vmax.f32 %v92_v16, %v2034_v53  ;;  %v2045_v44 = vld [vmem:[#allocation33_spill] sm:$0xff]  ;;  %v2047_v24 = vld [vmem:[#allocation34_spill] sm:$0xff]  ;;  %v2048_v7 = vld [vmem:[#allocation43_spill] sm:$0xff] }
  0x6f   :  { %v542_v42 = vsel %vm394_vm11, %v541_v32, %v540_v41  ;;  %v189_v43 = vmax.f32 %v93_v36, %v2035_v62  ;;  %v190_v52 = vmax.f32 %v94_v26, %v2036_v50  ;;  %v191_v8 = vmax.f32 %v95_v18, %v2037_v20  ;;  %v2049_v5 = vld [vmem:[#allocation35_spill] sm:$0xff]  ;;  %v2050_v31 = vld [vmem:[#allocation44_spill] sm:$0xff]  ;;  %v2052_v16 = vld [vmem:[#allocation45_spill] sm:$0xff] }
  0x70   :  { %v544_v11 = vsel %vm397_vm12, %v543_v63, %v542_v42  ;;  %v280_v54 = vmax.f32 %v184_v25, %v2038_v40  ;;  %v281_v29 = vmax.f32 %v185_v60, %v2039_v17  ;;  %v282_v23 = vmax.f32 %v186_v56, %v2040_v39  ;;  %v2051_v2 = vld [vmem:[#allocation36_spill] sm:$0xff]  ;;  %v2053_v28 = vld [vmem:[#allocation37_spill] sm:$0xff]  ;;  %v2054_v58 = vld [vmem:[#allocation46_spill] sm:$0xff] }
  0x71   :  { %772 = vmatmul.msk.f32.gmra.mxu2 %vm441_vm13, %v544_v11  ;;  %780 = vmatmul.msk.f32.gmra.mxu3 %vm441_vm13, %v544_v11  ;;  %v283_v9 = vmax.f32 %v187_v38, %v2041_v12  ;;  %v284_v1 = vmax.f32 %v188_v45, %v2042_v13  ;;  %v285_v33 = vmax.f32 %v189_v43, %v2043_v14  ;;  %v2055_v0 = vld [vmem:[#allocation38_spill] sm:$0xff]  ;;  %v2056_v26 = vld [vmem:[#allocation47_spill] sm:$0xff]  ;;  %v2058_v18 = vld [vmem:[#allocation48_spill] sm:$0xff] }
  0x72   :  { %787 = vmatmul.msk.f32.vlgmr.msrb.gmra.mxu0 %vm441_vm13, %v1637_v6  ;;  %764 = vmatmul.msk.f32.gmra.mxu1 %vm441_vm13, %v544_v11  ;;  %v286_v51 = vmax.f32 %v190_v52, %v2044_v34  ;;  %v287_v32 = vmax.f32 %v191_v8, %v2045_v44  ;;  %v545_v63 = vrot.slane %v281_v29, 7  ;;  %v547_v37 = vrot.slane %v282_v23, 6  ;;  %v2057_v3 = vld [vmem:[#allocation39_spill] sm:$0xff]  ;;  %v2059_v27 = vld [vmem:[#allocation40_spill] sm:$0xff]  ;;  %v2060_v57 = vld [vmem:[#allocation49_spill] sm:$0xff] }
  0x73   :  { %v549_v46 = vrot.slane %v283_v9, 5  ;;  %v551_v48 = vrot.slane %v284_v1, 4  ;;  %v96_v4 = vmax.f32 %v2047_v24, %v2046_v59  ;;  %v553_v19 = vrot.slane %v285_v33, 3  ;;  %v2061_v60 = vld [vmem:[#allocation41_spill] sm:$0xff]  ;;  %v2062_v56 = vld [vmem:[#allocation50_spill] sm:$0xff]  ;;  %v2063_v38 = vld [vmem:[#allocation51_spill] sm:$0xff] }
  0x74   :  { %v546_v35 = vsel %vm379_vm0, %v545_v63, %v280_v54  ;;  %v555_v55 = vrot.slane %v286_v51, 2  ;;  %v557_v6 = vrot.slane %v287_v32, 1  ;;  %v97_v49 = vmax.f32 %v2049_v5, %v2048_v7  ;;  %v2064_v45 = vld [vmem:[#allocation52_spill] sm:$0xff]  ;;  %v2065_v43 = vld [vmem:[#allocation53_spill] sm:$0xff]  ;;  %v2066_v52 = vld [vmem:[#allocation54_spill] sm:$0xff] }
  0x75   :  { %v548_v10 = vsel %vm382_vm3, %v547_v37, %v546_v35  ;;  %v98_v15 = vmax.f32 %v2051_v2, %v2050_v31  ;;  %v99_v30 = vmax.f32 %v2053_v28, %v2052_v16  ;;  %v100_v61 = vmax.f32 %v2055_v0, %v2054_v58  ;;  %v2067_v40 = vld [vmem:[#allocation55_spill] sm:$0xff]  ;;  %v2068_v17 = vld [vmem:[#allocation56_spill] sm:$0xff]  ;;  %v2069_v39 = vld [vmem:[#allocation57_spill] sm:$0xff] }
  0x76   :  { %v550_v36 = vsel %vm385_vm4, %v549_v46, %v548_v10  ;;  %v101_v22 = vmax.f32 %v2057_v3, %v2056_v26  ;;  %v102_v25 = vmax.f32 %v2059_v27, %v2058_v18  ;;  %v103_v21 = vmax.f32 %v2061_v60, %v2060_v57  ;;  %v2070_v9 = vld [vmem:[#allocation58_spill] sm:$0xff]  ;;  %v2071_v1 = vld [vmem:[#allocation59_spill] sm:$0xff]  ;;  %v2072_v33 = vld [vmem:[#allocation60_spill] sm:$0xff] }
  0x77   :  { %v552_v41 = vsel %vm388_vm9, %v551_v48, %v550_v36  ;;  %v192_v47 = vmax.f32 %v96_v4, %v2062_v56  ;;  %v193_v42 = vmax.f32 %v97_v49, %v2063_v38  ;;  %v194_v62 = vmax.f32 %v98_v15, %v2064_v45  ;;  %v2073_v51 = vld [vmem:[#allocation61_spill] sm:$0xff]  ;;  %v2074_v32 = vld [vmem:[#allocation62_spill] sm:$0xff]  ;;  %v2075_v37 = vld [vmem:[#allocation63_spill] sm:$0xff] }
  0x78   :  { %v554_v53 = vsel %vm391_vm10, %v553_v19, %v552_v41  ;;  %v195_v50 = vmax.f32 %v99_v30, %v2065_v43  ;;  %v196_v20 = vmax.f32 %v100_v61, %v2066_v52  ;;  %v197_v54 = vmax.f32 %v101_v22, %v2067_v40  ;;  %v2076_v48 = vld [vmem:[#allocation64_spill] sm:$0xff]  ;;  %v2077_v59 = vld [vmem:[#allocation65_spill] sm:$0xff] }
  0x79   :  { %v556_v8 = vsel %vm394_vm11, %v555_v55, %v554_v53  ;;  %v198_v29 = vmax.f32 %v102_v25, %v2068_v17  ;;  %v199_v23 = vmax.f32 %v103_v21, %v2069_v39  ;;  %v288_v13 = vmax.f32 %v192_v47, %v2070_v9 }
  0x7a   :  { %v558_v12 = vsel %vm397_vm12, %v557_v6, %v556_v8  ;;  %788 = vmatmul.msk.f32.gmra.mxu0 %vm441_vm13, %v544_v11  ;;  %v289_v14 = vmax.f32 %v193_v42, %v2071_v1  ;;  %v290_v34 = vmax.f32 %v194_v62, %v2072_v33  ;;  %v291_v44 = vmax.f32 %v195_v50, %v2073_v51 }
  0x7b   :  { %773 = vmatmul.msk.f32.gmra.mxu2 %vm441_vm13, %v558_v12  ;;  %781 = vmatmul.msk.f32.gmra.mxu3 %vm441_vm13, %v558_v12  ;;  %v292_v63 = vmax.f32 %v196_v20, %v2074_v32  ;;  %v293_v46 = vmax.f32 %v197_v54, %v2075_v37  ;;  %v294_v11 = vmax.f32 %v198_v29, %v2076_v48 }
  0x7c   :  { %765 = vmatmul.msk.f32.gmra.mxu1 %vm441_vm13, %v558_v12  ;;  %v295_v24 = vmax.f32 %v199_v23, %v2077_v59  ;;  %v559_v4 = vrot.slane %v289_v14, 7  ;;  %v561_v35 = vrot.slane %v290_v34, 6  ;;  %v563_v19 = vrot.slane %v291_v44, 5 }
  0x7d   :  { %v565_v55 = vrot.slane %v292_v63, 4  ;;  %v567_v10 = vrot.slane %v293_v46, 3  ;;  %v569_v5 = vrot.slane %v294_v11, 2 }
  0x7e   :  { %v560_v6 = vsel %vm379_vm0, %v559_v4, %v288_v13  ;;  %v571_v31 = vrot.slane %v295_v24, 1  ;;  %vm742_vm0 = vcmask 31744  }
  0x7f   :  { %v562_v7 = vsel %vm382_vm3, %v561_v35, %v560_v6 }
  0x80   :  { %v564_v49 = vsel %vm385_vm4, %v563_v19, %v562_v7 }
  0x81   :  { %v566_v2 = vsel %vm388_vm9, %v565_v55, %v564_v49 }
  0x82   :  { %v568_v15 = vsel %vm391_vm10, %v567_v10, %v566_v2  ;;  %789 = vmatmul.msk.f32.gmra.mxu0 %vm441_vm13, %v558_v12 }
  0x83   :  { %v570_v16 = vsel %vm394_vm11, %v569_v5, %v568_v15 }
  0x84   :  { %v572_v28 = vsel %vm397_vm12, %v571_v31, %v570_v16 }
  0x85   :  { %774 = vmatmul.msk.f32.gmra.mxu2 %vm441_vm13, %v572_v28  ;;  %782 = vmatmul.msk.f32.gmra.mxu3 %vm441_vm13, %v572_v28 }
  0x86   :  { %766 = vmatmul.msk.f32.gmra.mxu1 %vm441_vm13, %v572_v28 }
  0x8a   :  { %790 = vmatmul.msk.f32.gmra.mxu0 %vm441_vm13, %v572_v28 }
  0xaa   :  { %v473_v36 = vpop.f32.mrf.mxu2 }
  0xab   :  { %v736_v39 = vmul.f32 0.03125, %v473_v36 }
  0xc7   :  { %v476_v58 = vpop.f32.mrf.mxu3 }
  0xc8   :  { %v737_v44 = vmul.f32 0.03125, %v476_v58 }
  0xcd   :  { %v470_v30 = vpop.f32.mrf.mxu1 }
  0xce   :  { %v735_v62 = vmul.f32 0.03125, %v470_v30 }
  0xe1   :  { %v598_v0 = vpop.f32.mrf.mxu1 }
  0xe6   :  { %v634_v61 = vpop.f32.mrf.mxu2  ;;  %v467_v26 = vpop.f32.mrf.mxu0 }
  0xe7   :  { %v646_v3 = vmax.f32 %v598_v0, %v634_v61  ;;  %v674_v22 = vpop.f32.mrf.mxu3  ;;  %v734_v41 = vmul.f32 0.03125, %v467_v26 }
  0xe9   :  { %v686_v18 = vmax.f32 %v646_v3, %v674_v22 }
  0xef   :  { %v714_v27 = vpop.f32.mrf.mxu0  ;;  %v601_v60 = vpop.f32.mrf.mxu1 }
  0xf0   :  { %v726_v25 = vmax.f32 %v686_v18, %v714_v27 }
  0xf2   :  { %v730_v57 = vmul.f32 0.5, %v726_v25 }
  0xf4   :  { %v738_v21 = vadd.f32 %v734_v41, %v730_v57  ;;  %v637_v56 = vpop.f32.mrf.mxu2  ;;  %v677_v47 = vpop.f32.mrf.mxu3 }
  0xf5   :  { %v647_v38 = vmax.f32 %v601_v60, %v637_v56 }
  0xf6   :  { %743 = vst.msk [vmem:[%s1807_s1] sm:$0xff] %vm742_vm0, %v738_v21 }
  0xf7   :  { %v687_v42 = vmax.f32 %v647_v38, %v677_v47  ;;  %v717_v53 = vpop.f32.mrf.mxu0 }
  0xf9   :  { %v727_v45 = vmax.f32 %v687_v42, %v717_v53  ;;  %v604_v50 = vpop.f32.mrf.mxu1 }
  0xfb   :  { %v731_v43 = vmul.f32 0.5, %v727_v45 }
  0xfd   :  { %v739_v52 = vadd.f32 %v735_v62, %v731_v43 }
  0xfe   :  { %v640_v20 = vpop.f32.mrf.mxu2  ;;  %v680_v8 = vpop.f32.mrf.mxu3 }
  0xff   :  { %744 = vst.msk [vmem:[%s1807_s1 + $0x8] sm:$0xff] %vm742_vm0, %v739_v52  ;;  %v648_v40 = vmax.f32 %v604_v50, %v640_v20  ;;  %v720_v54 = vpop.f32.mrf.mxu0 }
 0x101   :  { %v688_v17 = vmax.f32 %v648_v40, %v680_v8 }
 0x103   :  { %v728_v29 = vmax.f32 %v688_v17, %v720_v54  ;;  %v607_v12 = vpop.f32.mrf.mxu1 }
 0x105   :  { %v732_v23 = vmul.f32 0.5, %v728_v29 }
 0x107   :  { %v740_v9 = vadd.f32 %v736_v39, %v732_v23  ;;  %v723_v33 = vpop.f32.mrf.mxu0 }
 0x108   :  { %v643_v13 = vpop.f32.mrf.mxu2  ;;  %v683_v1 = vpop.f32.mrf.mxu3 }
 0x109   :  { %745 = vst.msk [vmem:[%s1807_s1 + $0x10] sm:$0xff] %vm742_vm0, %v740_v9  ;;  %v649_v14 = vmax.f32 %v607_v12, %v643_v13 }
 0x10b   :  { %v689_v34 = vmax.f32 %v649_v14, %v683_v1 }
 0x10d   :  { %v729_v51 = vmax.f32 %v689_v34, %v723_v33 }
 0x10f   :  { %v733_v32 = vmul.f32 0.5, %v729_v51 }
 0x111   :  { %v741_v63 = vadd.f32 %v737_v44, %v733_v32 }
 0x113   :  { %746 = vst.msk [vmem:[%s1807_s1 + $0x18] sm:$0xff] %vm742_vm0, %v741_v63 }

</bundles_post_ra>
